<compile_context>
chip_gen: v6e
topology: v6e:2x2x1
jax: 0.10.0
libtpu: 0.0.40
codegen_flags: <defaults>
</compile_context>

<pallas_src>
import numpy as np
import jax
import jax.numpy as jnp
from jax import lax
from jax.experimental import pallas as pl
from jax.experimental.pallas import tpu as pltpu


def _round_up(x, m):
    return ((x + m - 1) // m) * m


# ----------------------------- Linear (+ReLU) --------------------------------
def _linear_relu_kernel(x_ref, w_ref, b_ref, o_ref):
    y = jnp.dot(x_ref[...], w_ref[...], preferred_element_type=jnp.float32)
    o_ref[...] = jnp.maximum(y + b_ref[...], 0.0)


def linear_relu(x, w, b):
    # x: (B, Din), w: (Din, Dout), b: (Dout,)
    B, Din = x.shape
    Dout = w.shape[1]
    return pl.pallas_call(
        _linear_relu_kernel,
        out_shape=jax.ShapeDtypeStruct((B, Dout), jnp.float32),
        grid=(1,),
        in_specs=[
            pl.BlockSpec((B, Din), lambda i: (0, 0)),
            pl.BlockSpec((Din, Dout), lambda i: (0, 0)),
            pl.BlockSpec((1, Dout), lambda i: (0, 0)),
        ],
        out_specs=pl.BlockSpec((B, Dout), lambda i: (0, 0)),
    )(x, w, b.reshape(1, Dout))


# ------------------------- ConvTranspose2d (+ReLU) ---------------------------
def _make_convT_kernel(Cin, Cout, kH, Tw, TM, n_row_tiles, apply_act):
    """Polyphase transposed-conv kernel.

    Per grid step (b, i) it produces, for compact row indices m in
    [i*TM, (i+1)*TM), the even output rows (oh = 2m) and odd output rows
    (oh = 2m+1) as two dense (TM, OWp) planes per output channel.
      even: out = sum_{ci,t} Xw_t[ci, m  ] * wt_t[kh=1, ci, co]
      odd : out = sum_{ci,t} Xw_t[ci, m  ] * wt_t[kh=2, ci, co]
                           + Xw_t[ci, m+1] * wt_t[kh=0, ci, co]
    (H params are stride 2 / kernel 3 / pad 1 / output_pad 1 for all layers.)
    """

    def kernel(xw_ref, w_ref, b_ref, o_ref):
        OWp = o_ref.shape[-1]
        if n_row_tiles > 1:
            rs = pl.multiple_of(pl.program_id(1) * TM, 8)
        else:
            rs = 0  # static

        # Accumulators (even plane, odd plane) per output channel, init = bias.
        accs = []
        for co in range(Cout):
            bval = b_ref[co]
            accs.append([jnp.full((TM, OWp), bval, dtype=jnp.float32),
                         jnp.full((TM, OWp), bval, dtype=jnp.float32)])

        for t in range(Tw):
            for ci in range(Cin):
                # Aligned slab read (TM + 8 rows); rows >= H are zero padding.
                slab = xw_ref[0, t, ci, pl.ds(rs, TM + 8), :].astype(jnp.float32)
                x0 = slab[0:TM, :]          # input rows m
                x1 = slab[1:TM + 1, :]      # input rows m + 1
                for co in range(Cout):
                    base = ((t * kH) * Cin + ci) * Cout + co
                    step = Cin * Cout
                    w0 = w_ref[base, :].reshape(1, OWp)             # kh = 0
                    w1 = w_ref[base + step, :].reshape(1, OWp)      # kh = 1
                    w2 = w_ref[base + 2 * step, :].reshape(1, OWp)  # kh = 2
                    acc_e, acc_o = accs[co]
                    acc_e = acc_e + x0 * w1
                    acc_o = acc_o + x0 * w2 + x1 * w0
                    accs[co] = [acc_e, acc_o]

        for co in range(Cout):
            acc_e, acc_o = accs[co]
            if apply_act:
                acc_e = jnp.maximum(acc_e, 0.0)
                acc_o = jnp.maximum(acc_o, 0.0)
            o_ref[0, co, 0, :, :] = acc_e   # even output rows
            o_ref[0, co, 1, :, :] = acc_o   # odd output rows

    return kernel


def _shifted_pad_last(x, shift, width):
    """y[..., j] = x[..., j + shift] if in range else 0; y has last dim `width`."""
    if shift >= 0:
        seg = x[..., shift:]
        lead = 0
    else:
        seg = x
        lead = -shift
    keep = max(0, width - lead)
    seg = seg[..., :keep]
    trail = width - lead - seg.shape[-1]
    pad = [(0, 0)] * (x.ndim - 1) + [(lead, trail)]
    return jnp.pad(seg, pad)


def conv_transpose2d(x, wt, bias, stride, padding, output_padding, apply_act,
                     row_tile=None, xw_dtype=jnp.float32):
    """PyTorch-semantics ConvTranspose2d (optionally + ReLU), polyphase Pallas.

    x   : (B, Cin, H, W) float32 (NCHW)
    wt  : (Cin, Cout, kH, kW)  -- PyTorch ConvTranspose2d weight layout
    bias: (Cout,)
    """
    B, Cin, H, W = x.shape
    _, Cout, kH, kW = wt.shape
    sh, sw = stride
    ph, pw = padding
    oph, opw = output_padding
    # All decoder layers use stride 2 / kernel 3 / pad 1 / output_pad 1 along H.
    assert (sh, ph, oph, kH) == (2, 1, 1, 3) and pw == 1
    OH = (H - 1) * sh - 2 * ph + kH + oph          # == 2 * H
    OW = (W - 1) * sw - 2 * pw + kW + opw
    OWp = _round_up(OW, 128)                        # lane-dense output width
    Tw = -(-kW // sw)                               # ceil(kW / sw): W taps/col
    Hp = H + 8                                      # halo row + alignment (zeros)
    TM = row_tile if row_tile is not None else H
    assert H % TM == 0
    n_rt = H // TM

    # ---- W-axis polyphase staging (cheap XLA glue on the compact input) -----
    xs = x.astype(xw_dtype)
    rep = jnp.repeat(xs, sw, axis=-1)               # rep[..., j] = x[..., j // sw]
    xw = jnp.stack(
        [_shifted_pad_last(rep, pw - t * sw, OWp) for t in range(Tw)], axis=1)
    xw = jnp.pad(xw, ((0, 0), (0, 0), (0, 0), (0, Hp - H), (0, 0)))
    # xw: (B, Tw, Cin, Hp, OWp) with xw[b,t,ci,m,ow] = x[b,ci,m,(ow+pw)//sw - t]

    # ---- periodically tiled weight rows (zero where the kw tap is invalid) --
    ow_idx = jnp.arange(OWp)
    planes = []
    for t in range(Tw):
        kw_idx = (ow_idx + pw) % sw + t * sw
        valid = kw_idx < kW
        gathered = wt[:, :, :, jnp.minimum(kw_idx, kW - 1)]       # (Cin,Cout,kH,OWp)
        plane = jnp.where(valid[None, None, None, :], gathered, 0.0)
        planes.append(jnp.transpose(plane, (2, 0, 1, 3)))          # (kH,Cin,Cout,OWp)
    wt2d = jnp.stack(planes, axis=0).reshape(Tw * kH * Cin * Cout, OWp)
    wt2d = wt2d.astype(jnp.float32)

    kernel = _make_convT_kernel(Cin, Cout, kH, Tw, TM, n_rt, apply_act)
    out5 = pl.pallas_call(
        kernel,
        out_shape=jax.ShapeDtypeStruct((B, Cout, 2, H, OWp), jnp.float32),
        grid=(B, n_rt),
        in_specs=[
            # whole per-batch repeated input, resident across row tiles
            pl.BlockSpec((1, Tw, Cin, Hp, OWp), lambda b, i: (b, 0, 0, 0, 0)),
            # tiled weight rows, resident
            pl.BlockSpec((Tw * kH * Cin * Cout, OWp), lambda b, i: (0, 0)),
            # bias scalars
            pl.BlockSpec(memory_space=pltpu.MemorySpace.SMEM),
        ],
        out_specs=pl.BlockSpec((1, Cout, 2, TM, OWp),
                               lambda b, i: (b, 0, 0, i, 0)),
        compiler_params=pltpu.CompilerParams(
            dimension_semantics=("parallel", "parallel"),
            vmem_limit_bytes=48 * 1024 * 1024),
    )(xw, wt2d, bias)

    # Interleave the two H phases ((..,2,H,OWp) -> (..,2H,OWp)) and crop W.
    # Single lane-dense XLA copy (the crop is folded into it).
    out = jnp.transpose(out5, (0, 1, 3, 2, 4)).reshape(B, Cout, OH, OWp)
    return out[:, :, :, :OW]


# ------------------------------- Decoder --------------------------------------
_CONV_CFG = [
    # (weight, bias, stride,  padding, out_pad, act,  row_tile, staging dtype)
    ("w1", "b1", (2, 2),  (1, 1), (1, 1), True,  None, jnp.float32),
    ("w2", "b2", (2, 2),  (1, 1), (1, 1), True,  None, jnp.float32),
    ("w3", "b3", (2, 3),  (1, 1), (1, 2), True,  None, jnp.float32),
    ("w4", "b4", (2, 29), (1, 1), (1, 2), False, 32,   jnp.bfloat16),
]


def init_params(key, num_input_channels=3, base_c=4, latent_dim=32):
    c = base_c
    ks = jax.random.split(key, 10)

    def nrm(k, shape, fan_in):
        return (jax.random.normal(k, shape, jnp.float32) / np.sqrt(fan_in)).astype(jnp.float32)

    p = {}
    p["lin_w"] = nrm(ks[0], (latent_dim, 512 * c), latent_dim)   # stored as (in, out)
    p["lin_b"] = 0.1 * jax.random.normal(ks[1], (512 * c,), jnp.float32)
    # ConvTranspose2d weights in PyTorch layout (Cin, Cout, kH, kW)
    p["w1"] = nrm(ks[2], (2 * c, 2 * c, 3, 3), 2 * c * 9)
    p["b1"] = 0.1 * jax.random.normal(ks[3], (2 * c,), jnp.float32)
    p["w2"] = nrm(ks[4], (2 * c, 2 * c, 3, 3), 2 * c * 9)
    p["b2"] = 0.1 * jax.random.normal(ks[5], (2 * c,), jnp.float32)
    p["w3"] = nrm(ks[6], (2 * c, c, 3, 5), 2 * c * 15)
    p["b3"] = 0.1 * jax.random.normal(ks[7], (c,), jnp.float32)
    p["w4"] = nrm(ks[8], (c, num_input_channels, 3, 29), c * 3 * 29)
    p["b4"] = 0.1 * jax.random.normal(ks[9], (num_input_channels,), jnp.float32)
    return p


def decoder_forward(params, z):
    x = linear_relu(z, params["lin_w"], params["lin_b"])   # Pallas: Linear + ReLU
    x = x.reshape(x.shape[0], -1, 16, 16)                  # (B, 2*c, 16, 16), NCHW
    for wn, bn, s, p, op, act, rt, xdt in _CONV_CFG:
        x = conv_transpose2d(x, params[wn], params[bn], s, p, op, act,
                             row_tile=rt, xw_dtype=xdt)
    return x


def decoder_reference(params, z):
    # Pure-JAX reference (XLA), same math, for a numerical sanity check.
    x = jnp.maximum(z @ params["lin_w"] + params["lin_b"], 0.0)
    x = x.reshape(x.shape[0], -1, 16, 16)
    for wn, bn, s, p, op, act, _rt, _xdt in _CONV_CFG:
        wt, b = params[wn], params[bn]
        kH, kW = wt.shape[2], wt.shape[3]
        w = jnp.transpose(jnp.flip(wt, axis=(2, 3)), (1, 0, 2, 3))
        y = lax.conv_general_dilated(
            x, w, window_strides=(1, 1),
            padding=((kH - 1 - p[0], kH - 1 - p[0] + op[0]),
                     (kW - 1 - p[1], kW - 1 - p[1] + op[1])),
            lhs_dilation=s, rhs_dilation=(1, 1),
            dimension_numbers=("NCHW", "OIHW", "NCHW"),
            precision=lax.Precision.HIGHEST)
        x = y + b[None, :, None, None]
        if act:
            x = jnp.maximum(x, 0.0)
    return x


if __name__ == "__main__":
    key = jax.random.PRNGKey(0)
    k_param, k_z = jax.random.split(key)
    B, C_IMG, C_BASE, LATENT = 2, 3, 4, 32
    params = init_params(k_param, C_IMG, C_BASE, LATENT)
    z = jax.random.normal(k_z, (B, LATENT), jnp.float32)

    out = decoder_forward(params, z)
    out = jax.block_until_ready(out)
    expected_shape = (B, C_IMG, 256, 5626)
    assert out.shape == expected_shape, (out.shape, expected_shape)

    ref = jax.block_until_ready(decoder_reference(params, z))
    err = float(jnp.max(jnp.abs(out - ref)))
    scale = float(jnp.max(jnp.abs(ref))) + 1e-6
    assert err <= 1e-2 * scale, f"mismatch: max|err|={err}, scale={scale}"
    print("KERNEL_OK")
</pallas_src>

<mosaic_0001>
module attributes {stable_mosaic.version = 11 : i64} {
  func.func @_linear_relu_kernel(%arg0: i32, %arg1: memref<2x32xf32, #tpu.memory_space<vmem>>, %arg2: memref<32x2048xf32, #tpu.memory_space<vmem>>, %arg3: memref<1x2048xf32, #tpu.memory_space<vmem>>, %arg4: memref<2x2048xf32, #tpu.memory_space<vmem>>) attributes {dimension_semantics = [#tpu.dimension_semantics<arbitrary>], iteration_bounds = array<i64: 1>, scalar_prefetch = 0 : i64, scratch_operands = 0 : i64, tpu.core_type = #tpu.core_type<tc>, window_params = [{pipeline_mode = #tpu.pipeline_mode<synchronous>, transform_indices = @transform_0, window_bounds = array<i64: 2, 32>}, {pipeline_mode = #tpu.pipeline_mode<synchronous>, transform_indices = @transform_1, window_bounds = array<i64: 32, 2048>}, {pipeline_mode = #tpu.pipeline_mode<synchronous>, transform_indices = @transform_2, window_bounds = array<i64: 1, 2048>}, {pipeline_mode = #tpu.pipeline_mode<synchronous>, transform_indices = @transform_3, window_bounds = array<i64: 2, 2048>}]} {
    %c0 = arith.constant 0 : index
    %c0_0 = arith.constant 0 : index
    %0 = vector.load %arg1[%c0, %c0_0] : memref<2x32xf32, #tpu.memory_space<vmem>>, vector<2x32xf32>
    %c0_1 = arith.constant 0 : index
    %c0_2 = arith.constant 0 : index
    %1 = vector.load %arg2[%c0_1, %c0_2] : memref<32x2048xf32, #tpu.memory_space<vmem>>, vector<32x2048xf32>
    %cst = arith.constant dense<0.000000e+00> : vector<2x2048xf32>
    %2 = tpu.matmul %0, %1, %cst {dimension_numbers = #tpu.dot_dimension_numbers<[1], [0], [0], [1], [0, 0, 1, 1], [], []>} : vector<2x32xf32>, vector<32x2048xf32>, vector<2x2048xf32> -> vector<2x2048xf32>
    %c0_3 = arith.constant 0 : index
    %c0_4 = arith.constant 0 : index
    %3 = vector.load %arg3[%c0_3, %c0_4] : memref<1x2048xf32, #tpu.memory_space<vmem>>, vector<1x2048xf32>
    %4 = vector.broadcast %3 : vector<1x2048xf32> to vector<2x2048xf32>
    %5 = arith.addf %2, %4 : vector<2x2048xf32>
    %cst_5 = arith.constant 0.000000e+00 : f32
    %6 = vector.broadcast %cst_5 : f32 to vector<2x2048xf32>
    %7 = arith.maximumf %5, %6 : vector<2x2048xf32>
    %c0_6 = arith.constant 0 : index
    %c0_7 = arith.constant 0 : index
    %8 = vector.load %arg4[%c0_6, %c0_7] : memref<2x2048xf32, #tpu.memory_space<vmem>>, vector<2x2048xf32>
    tpu.vector_store %arg4[%c0_6, %c0_7], %7 {strides = array<i32>} : memref<2x2048xf32, #tpu.memory_space<vmem>>, vector<2x2048xf32>,
    return
  }
  func.func @transform_0(%arg0: i32) -> (i32, i32) {
    %c0_i32 = arith.constant 0 : i32
    %c0_i32_0 = arith.constant 0 : i32
    %c0_i32_1 = arith.constant 0 : i32
    return %c0_i32, %c0_i32_0 : i32, i32
  }
  func.func @transform_1(%arg0: i32) -> (i32, i32) {
    %c0_i32 = arith.constant 0 : i32
    %c0_i32_0 = arith.constant 0 : i32
    %c0_i32_1 = arith.constant 0 : i32
    return %c0_i32, %c0_i32_0 : i32, i32
  }
  func.func @transform_2(%arg0: i32) -> (i32, i32) {
    %c0_i32 = arith.constant 0 : i32
    %c0_i32_0 = arith.constant 0 : i32
    %c0_i32_1 = arith.constant 0 : i32
    return %c0_i32, %c0_i32_0 : i32, i32
  }
  func.func @transform_3(%arg0: i32) -> (i32, i32) {
    %c0_i32 = arith.constant 0 : i32
    %c0_i32_0 = arith.constant 0 : i32
    %c0_i32_1 = arith.constant 0 : i32
    return %c0_i32, %c0_i32_0 : i32, i32
  }
}

</mosaic_0001>

<bundles_post_ra>
// kernel: tpu_custom_call.1
= control target key start
LH: loop header
LB: loop body
LE: loop exit
PB: predicated region body
PF: predicated region fallthrough
CT: control target
= control target key end

     0   :  { %8 = vsyncpa [#allocation3], 0  ;;  %s1086_s0 = inlined_call_operand.hbm [shape: f32[2,32], index: 0, kind: input, shape index: {}]   ;;  %s1087_s1 = inlined_call_operand.hbm [shape: f32[32,2048], index: 1, kind: input, shape index: {}]   ;;  %s1088_s2 = inlined_call_operand.hbm [shape: f32[1,2048], index: 2, kind: input, shape index: {}]   ;;  %s1089_s3 = inlined_call_operand.hbm [shape: f32[2,2048], index: 3, kind: output, shape index: {}]  }
   0x1   :  { %9 = vsyncpa [#allocation6], 0 }
   0x2   :  { %10 = vsyncpa [#allocation4], 0  ;;  %s999_s12 = smov [#allocation5]  }
   0x3   :  { %s26_s13 = sshll.u32 %s999_s12, 4  ;;  %s27_s13 = int_to_ptr.vmem [resolvable:$true] %s26_s13 }
   0x4   :  { %s921_s14 = scalar_lea.vmem %s27_s13, 8192  ;;  %p926_p1 = scmp.lt.s32.totalorder %s27_s13, %s27_s13 }
   0x5   :  { %p922_p0 = scmp.ne.s32.totalorder %s27_s13, %s921_s14  ;;  %p927_p2 = scmp.lt.s32.totalorder %s921_s14, %s921_s14 }
   0x7   :  { %p928_p3 = por %p927_p2, %p926_p1 }
   0x9   :  { %p929_p4 = pnand %p928_p3, %p922_p0 }
   0xb   :  { %932 = shalt.err (!%p929_p4)
}
   0xc   :  { %s1000_s15 = smov 2048   ;;  %s1001_s16 = smov 128  }
   0xd   :  { %32 = dma.hbm_to_vmem [thread:$0]  %s1087_s1, 8192, %s27_s13, [#allocation6], %s1000_s15, %s1000_s15, %s1001_s16  }
   0xe   :  { %s1002_s19 = smov [#allocation2]   ;;  %s1003_s21 = smov [#allocation7]  }
   0xf   :  { %s17_s20 = sshll.u32 %s1002_s19, 4  ;;  %s39_s22 = sshll.u32 %s1003_s21, 4  ;;  %s18_s20 = int_to_ptr.vmem [resolvable:$true] %s17_s20  ;;  %s40_s22 = int_to_ptr.vmem [resolvable:$true] %s39_s22 }
  0x10   :  { %s941_s23 = scalar_lea.vmem %s18_s20, 32  ;;  %p946_p6 = scmp.lt.s32.totalorder %s18_s20, %s18_s20 }
  0x11   :  { %p942_p5 = scmp.ne.s32.totalorder %s18_s20, %s941_s23  ;;  %p947_p7 = scmp.lt.s32.totalorder %s941_s23, %s941_s23 }
  0x13   :  { %p948_p8 = por %p947_p7, %p946_p6 }
  0x15   :  { %p949_p9 = pnand %p948_p8, %p942_p5 }
  0x17   :  { %952 = shalt.err (!%p949_p9)
}
  0x18   :  { %20 = dma.hbm_to_vmem [thread:$0]  %s1086_s0, 32, %s18_s20, [#allocation3]  }
  0x19   :  { %s961_s26 = scalar_lea.vmem %s40_s22, 256  ;;  %p966_p11 = scmp.lt.s32.totalorder %s40_s22, %s40_s22 }
  0x1a   :  { %p962_p10 = scmp.ne.s32.totalorder %s40_s22, %s961_s26  ;;  %p967_p12 = scmp.lt.s32.totalorder %s961_s26, %s961_s26 }
  0x1c   :  { %p968_p13 = por %p967_p12, %p966_p11 }
  0x1e   :  { %p969_p0 = pnand %p968_p13, %p962_p10 }
  0x20   :  { %972 = shalt.err (!%p969_p0)
}
  0x21   :  { %42 = dma.hbm_to_vmem [thread:$0]  %s1088_s2, 256, %s40_s22, [#allocation6]  }
  0x22   :  { %993 = dma.done.wait [#allocation3], 32  }
  0x23   :  { %994 = vsyncadd [#allocation3], 4294967264 }
  0x24   :  { %995 = dma.done.wait [#allocation6], 8448  }
  0x25   :  { %996 = vsyncadd [#allocation6], 4294958848  ;;  %v1004_v0 = vmov 0.0   ;;  %v102_v1 = vld [vmem:[#allocation5 + $0x188] sm:$0xff]  ;;  %v104_v2 = vld [vmem:[#allocation5 + $0x198] sm:$0xff]  ;;  %vm201_vm0 = vcmask 261120  }
  0x26   :  { %269 = vmatprep.mubr.f32.mxu0 %v1004_v0  ;;  %340 = vmatprep.mubr.f32.mxu1 %v1004_v0  ;;  %v101_v3 = vld [vmem:[#allocation5 + $0x180] sm:$0xff]  ;;  %v103_v4 = vld [vmem:[#allocation5 + $0x190] sm:$0xff]  ;;  %v86_v5 = vld [vmem:[#allocation5 + $0x108] sm:$0xff]  ;;  %s1006_s0 = smov [#allocation8]  }
  0x27   :  { %229 = vmatprep.subr.mxu0 %v102_v1  ;;  %300 = vmatprep.subr.mxu1 %v104_v2  ;;  %v88_v6 = vld [vmem:[#allocation5 + $0x118] sm:$0xff]  ;;  %v85_v7 = vld [vmem:[#allocation5 + $0x100] sm:$0xff]  ;;  %v87_v8 = vld [vmem:[#allocation5 + $0x110] sm:$0xff]  ;;  %s887_s2 = sshll.u32 %s1006_s0, 4  ;;  %s888_s2 = int_to_ptr.vmem [resolvable:$true] %s887_s2 }
  0x28   :  { %230 = vmatpush1.msra.mxu0 %v101_v3  ;;  %301 = vmatpush1.msra.mxu1 %v103_v4  ;;  %v70_v9 = vld [vmem:[#allocation5 + $0x88] sm:$0xff]  ;;  %v72_v10 = vld [vmem:[#allocation5 + $0x98] sm:$0xff]  ;;  %v69_v11 = vld [vmem:[#allocation5 + $0x80] sm:$0xff]  ;;  %v121_v3 = vlaneseq  ;;  %s973_s28 = scalar_lea.vmem %s888_s2, 512  ;;  %p978_p2 = scmp.lt.s32.totalorder %s888_s2, %s888_s2 }
  0x29   :  { %231 = vmatprep.subr.mxu0 %v86_v5  ;;  %302 = vmatprep.subr.mxu1 %v88_v6  ;;  %v71_v12 = vld [vmem:[#allocation5 + $0x90] sm:$0xff]  ;;  %v54_v13 = vld [vmem:[#allocation5 + $0x8] sm:$0xff]  ;;  %v56_v14 = vld [vmem:[#allocation5 + $0x18] sm:$0xff]  ;;  %p974_p1 = scmp.ne.s32.totalorder %s888_s2, %s973_s28  ;;  %p979_p3 = scmp.lt.s32.totalorder %s973_s28, %s973_s28 }
  0x2a   :  { %232 = vmatpush1.msra.mxu0 %v85_v7  ;;  %303 = vmatpush1.msra.mxu1 %v87_v8  ;;  %v53_v15 = vld [vmem:[#allocation5] sm:$0xff]  ;;  %v55_v16 = vld [vmem:[#allocation5 + $0x10] sm:$0xff]  ;;  %v1038_v17 = vld [vmem:[#allocation2] sm:$0x3]  ;;  %v1062_v4 = vshrl.u32 %v121_v3, 7 }
  0x2b   :  { %233 = vmatprep.subr.mxu0 %v70_v9  ;;  %304 = vmatprep.subr.mxu1 %v72_v10  ;;  %v106_v18 = vld [vmem:[#allocation5 + $0x1a8] sm:$0xff]  ;;  %v108_v19 = vld [vmem:[#allocation5 + $0x1b8] sm:$0xff]  ;;  %v105_v20 = vld [vmem:[#allocation5 + $0x1a0] sm:$0xff]  ;;  %v1005_v10 = vmov 1983009808   ;;  %p980_p4 = por %p979_p3, %p978_p2 }
  0x2c   :  { %234 = vmatpush1.msra.mxu0 %v69_v11  ;;  %305 = vmatpush1.msra.mxu1 %v71_v12  ;;  %v107_v21 = vld [vmem:[#allocation5 + $0x1b0] sm:$0xff]  ;;  %v90_v22 = vld [vmem:[#allocation5 + $0x128] sm:$0xff]  ;;  %v92_v23 = vld [vmem:[#allocation5 + $0x138] sm:$0xff]  ;;  %v123_v5 = vsub.s32 0, %v1062_v4  ;;  %v131_v6 = vsub.s32 2, %v1062_v4  ;;  %v127_v8 = vsub.s32 1, %v1062_v4 }
  0x2d   :  { %235 = vmatprep.subr.mxu0 %v54_v13  ;;  %306 = vmatprep.subr.mxu1 %v56_v14  ;;  %v89_v24 = vld [vmem:[#allocation5 + $0x120] sm:$0xff]  ;;  %v91_v25 = vld [vmem:[#allocation5 + $0x130] sm:$0xff]  ;;  %v74_v26 = vld [vmem:[#allocation5 + $0xa8] sm:$0xff]  ;;  %v135_v9 = vsub.s32 3, %v1062_v4  ;;  %p981_p5 = pnand %p980_p4, %p974_p1 }
  0x2e   :  { %236 = vmatpush1.msra.mxu0 %v53_v15  ;;  %307 = vmatpush1.msra.mxu1 %v55_v16  ;;  %v76_v27 = vld [vmem:[#allocation5 + $0xb8] sm:$0xff]  ;;  %v73_v28 = vld [vmem:[#allocation5 + $0xa0] sm:$0xff]  ;;  %v75_v29 = vld [vmem:[#allocation5 + $0xb0] sm:$0xff] }
  0x2f   :  { %897 = vmatmul.mubr.msk.f32.vlgmr.msra.gmra.mxu0 %vm201_vm0, %v1038_v17  ;;  %898 = vmatmul.mubr.msk.f32.vlgmr.msra.gmra.mxu1 %vm201_vm0, %v1038_v17  ;;  %v58_v30 = vld [vmem:[#allocation5 + $0x28] sm:$0xff]  ;;  %v60_v31 = vld [vmem:[#allocation5 + $0x38] sm:$0xff]  ;;  %v57_v32 = vld [vmem:[#allocation5 + $0x20] sm:$0xff] }
  0x30   :  { %371 = vmatprep.subr.mxu0 %v106_v18  ;;  %442 = vmatprep.subr.mxu1 %v108_v19  ;;  %v59_v33 = vld [vmem:[#allocation5 + $0x30] sm:$0xff]  ;;  %v110_v34 = vld [vmem:[#allocation5 + $0x1c8] sm:$0xff]  ;;  %v112_v35 = vld [vmem:[#allocation5 + $0x1d8] sm:$0xff] }
  0x31   :  { %372 = vmatpush1.msra.mxu0 %v105_v20  ;;  %443 = vmatpush1.msra.mxu1 %v107_v21  ;;  %v109_v36 = vld [vmem:[#allocation5 + $0x1c0] sm:$0xff]  ;;  %v111_v37 = vld [vmem:[#allocation5 + $0x1d0] sm:$0xff]  ;;  %v94_v38 = vld [vmem:[#allocation5 + $0x148] sm:$0xff] }
  0x32   :  { %373 = vmatprep.subr.mxu0 %v90_v22  ;;  %444 = vmatprep.subr.mxu1 %v92_v23  ;;  %v96_v39 = vld [vmem:[#allocation5 + $0x158] sm:$0xff]  ;;  %v93_v40 = vld [vmem:[#allocation5 + $0x140] sm:$0xff]  ;;  %v95_v41 = vld [vmem:[#allocation5 + $0x150] sm:$0xff]  ;;  %v139_v22 = vsub.s32 4, %v1062_v4  ;;  %v147_v23 = vsub.s32 6, %v1062_v4 }
  0x33   :  { %374 = vmatpush1.msra.mxu0 %v89_v24  ;;  %445 = vmatpush1.msra.mxu1 %v91_v25  ;;  %v78_v42 = vld [vmem:[#allocation5 + $0xc8] sm:$0xff]  ;;  %v80_v43 = vld [vmem:[#allocation5 + $0xd8] sm:$0xff]  ;;  %v77_v44 = vld [vmem:[#allocation5 + $0xc0] sm:$0xff] }
  0x34   :  { %375 = vmatprep.subr.mxu0 %v74_v26  ;;  %446 = vmatprep.subr.mxu1 %v76_v27  ;;  %v79_v45 = vld [vmem:[#allocation5 + $0xd0] sm:$0xff]  ;;  %v62_v46 = vld [vmem:[#allocation5 + $0x48] sm:$0xff]  ;;  %v64_v47 = vld [vmem:[#allocation5 + $0x58] sm:$0xff] }
  0x35   :  { %376 = vmatpush1.msra.mxu0 %v73_v28  ;;  %447 = vmatpush1.msra.mxu1 %v75_v29  ;;  %v61_v48 = vld [vmem:[#allocation5 + $0x40] sm:$0xff]  ;;  %v63_v49 = vld [vmem:[#allocation5 + $0x50] sm:$0xff]  ;;  %v114_v50 = vld [vmem:[#allocation5 + $0x1e8] sm:$0xff] }
  0x36   :  { %377 = vmatprep.subr.mxu0 %v58_v30  ;;  %448 = vmatprep.subr.mxu1 %v60_v31  ;;  %v116_v51 = vld [vmem:[#allocation5 + $0x1f8] sm:$0xff]  ;;  %v113_v52 = vld [vmem:[#allocation5 + $0x1e0] sm:$0xff]  ;;  %v115_v53 = vld [vmem:[#allocation5 + $0x1f0] sm:$0xff]  ;;  %v143_v31 = vsub.s32 5, %v1062_v4 }
  0x37   :  { %378 = vmatpush1.msra.mxu0 %v57_v32  ;;  %411 = vmatprep.mubr.f32.mxu0 %v1004_v0  ;;  %v98_v54 = vld [vmem:[#allocation5 + $0x168] sm:$0xff]  ;;  %v100_v55 = vld [vmem:[#allocation5 + $0x178] sm:$0xff]  ;;  %v97_v56 = vld [vmem:[#allocation5 + $0x160] sm:$0xff]  ;;  %v151_v32 = vsub.s32 7, %v1062_v4 }
  0x38   :  { %449 = vmatpush1.msra.mxu1 %v59_v33  ;;  %482 = vmatprep.mubr.f32.mxu1 %v1004_v0  ;;  %v99_v57 = vld [vmem:[#allocation5 + $0x170] sm:$0xff]  ;;  %v82_v58 = vld [vmem:[#allocation5 + $0xe8] sm:$0xff]  ;;  %v84_v59 = vld [vmem:[#allocation5 + $0xf8] sm:$0xff] }
  0x39   :  { %899 = vmatmul.mubr.msk.f32.vlgmr.msra.gmra.mxu0 %vm201_vm0, %v1038_v17  ;;  %900 = vmatmul.mubr.msk.f32.vlgmr.msra.gmra.mxu1 %vm201_vm0, %v1038_v17  ;;  %v81_v60 = vld [vmem:[#allocation5 + $0xe0] sm:$0xff]  ;;  %v83_v61 = vld [vmem:[#allocation5 + $0xf0] sm:$0xff]  ;;  %v66_v62 = vld [vmem:[#allocation5 + $0x68] sm:$0xff] }
  0x3a   :  { %513 = vmatprep.subr.mxu0 %v110_v34  ;;  %584 = vmatprep.subr.mxu1 %v112_v35  ;;  %v68_v63 = vld [vmem:[#allocation5 + $0x78] sm:$0xff]  ;;  %v65_v1 = vld [vmem:[#allocation5 + $0x60] sm:$0xff]  ;;  %v67_v2 = vld [vmem:[#allocation5 + $0x70] sm:$0xff] }
  0x3b   :  { %514 = vmatpush1.msra.mxu0 %v109_v36  ;;  %585 = vmatpush1.msra.mxu1 %v111_v37  ;;  %v117_v7 = vld [vmem:[#allocation7] sm:$0xff] }
  0x3c   :  { %515 = vmatprep.subr.mxu0 %v94_v38  ;;  %586 = vmatprep.subr.mxu1 %v96_v39  ;;  %v124_v11 = vrot.slane %v117_v7, %v123_v5  ;;  %v132_v12 = vrot.slane %v117_v7, %v131_v6  ;;  %v128_v13 = vrot.slane %v117_v7, %v127_v8 }
  0x3d   :  { %516 = vmatpush1.msra.mxu0 %v93_v40  ;;  %587 = vmatpush1.msra.mxu1 %v95_v41  ;;  %v136_v14 = vrot.slane %v117_v7, %v135_v9  ;;  %v140_v35 = vrot.slane %v117_v7, %v139_v22  ;;  %v148_v36 = vrot.slane %v117_v7, %v147_v23 }
  0x3e   :  { %517 = vmatprep.subr.mxu0 %v78_v42  ;;  %588 = vmatprep.subr.mxu1 %v80_v43  ;;  %v144_v39 = vrot.slane %v117_v7, %v143_v31  ;;  %v152_v40 = vrot.slane %v117_v7, %v151_v32 }
  0x3f   :  { %518 = vmatpush1.msra.mxu0 %v77_v44  ;;  %589 = vmatpush1.msra.mxu1 %v79_v45 }
  0x40   :  { %519 = vmatprep.subr.mxu0 %v62_v46  ;;  %590 = vmatprep.subr.mxu1 %v64_v47 }
  0x41   :  { %520 = vmatpush1.msra.mxu0 %v61_v48  ;;  %553 = vmatprep.mubr.f32.mxu0 %v1004_v0 }
  0x42   :  { %591 = vmatpush1.msra.mxu1 %v63_v49  ;;  %624 = vmatprep.mubr.f32.mxu1 %v1004_v0 }
  0x43   :  { %901 = vmatmul.mubr.msk.f32.vlgmr.msra.gmra.mxu0 %vm201_vm0, %v1038_v17  ;;  %902 = vmatmul.mubr.msk.f32.vlgmr.msra.gmra.mxu1 %vm201_vm0, %v1038_v17 }
  0x44   :  { %655 = vmatprep.subr.mxu0 %v114_v50  ;;  %726 = vmatprep.subr.mxu1 %v116_v51 }
  0x45   :  { %656 = vmatpush1.msra.mxu0 %v113_v52  ;;  %727 = vmatpush1.msra.mxu1 %v115_v53  ;;  %v118_v52 = vld [vmem:[#allocation7 + $0x8] sm:$0xff] }
  0x46   :  { %657 = vmatprep.subr.mxu0 %v98_v54  ;;  %728 = vmatprep.subr.mxu1 %v100_v55 }
  0x47   :  { %658 = vmatpush1.msra.mxu0 %v97_v56  ;;  %729 = vmatpush1.msra.mxu1 %v99_v57  ;;  %v156_v57 = vrot.slane %v118_v52, %v123_v5 }
  0x48   :  { %659 = vmatprep.subr.mxu0 %v82_v58  ;;  %730 = vmatprep.subr.mxu1 %v84_v59  ;;  %v164_v58 = vrot.slane %v118_v52, %v131_v6 }
  0x49   :  { %660 = vmatpush1.msra.mxu0 %v81_v60  ;;  %731 = vmatpush1.msra.mxu1 %v83_v61  ;;  %v160_v61 = vrot.slane %v118_v52, %v127_v8 }
  0x4a   :  { %661 = vmatprep.subr.mxu0 %v66_v62  ;;  %732 = vmatprep.subr.mxu1 %v68_v63  ;;  %v168_v62 = vrot.slane %v118_v52, %v135_v9 }
  0x4b   :  { %662 = vmatpush1.msra.mxu0 %v65_v1  ;;  %695 = vmatprep.mubr.f32.mxu0 %v1004_v0 }
  0x4c   :  { %733 = vmatpush1.msra.mxu1 %v67_v2  ;;  %766 = vmatprep.mubr.f32.mxu1 %v1004_v0  ;;  %v808_v0 = vunpack.c.l.s4 %v1005_v10 }
  0x4d   :  { %903 = vmatmul.mubr.msk.f32.vlgmr.msra.gmra.mxu0 %vm201_vm0, %v1038_v17  ;;  %904 = vmatmul.mubr.msk.f32.vlgmr.msra.gmra.mxu1 %vm201_vm0, %v1038_v17 }
  0x4e   :  { %v809_v17 = vunpack.c.0.s8 %v808_v0 }
  0x50   :  { %v1071_v28 = vsub.s32 %v809_v17, %v1062_v4  ;;  %v180_v17 = vrot.slane %v118_v52, %v147_v23 }
  0xef   :  { %v271_v15 = vpop.f32.mrf.mxu0  ;;  %v342_v16 = vpop.f32.mrf.mxu1 }
  0xf0   :  { %v272_v18 = vadd.f32 %v271_v15, %v124_v11  ;;  %v343_v19 = vadd.f32 %v342_v16, %v132_v12  ;;  %v172_v16 = vrot.slane %v118_v52, %v139_v22 }
  0xf1   :  { %v273_v20 = vpop.f32.mrf.mxu0  ;;  %v344_v21 = vpop.f32.mrf.mxu1 }
  0xf2   :  { %v773_v24 = vmax.f32 %v272_v18, 0.0  ;;  %v775_v25 = vmax.f32 %v343_v19, 0.0  ;;  %v274_v26 = vadd.f32 %v273_v20, %v128_v13  ;;  %v345_v27 = vadd.f32 %v344_v21, %v136_v14 }
  0xf3   :  { %v176_v18 = vrot.slane %v118_v52, %v143_v31  ;;  %v184_v19 = vrot.slane %v118_v52, %v151_v32 }
  0xf4   :  { %v774_v29 = vmax.f32 %v274_v26, 0.0  ;;  %v776_v30 = vmax.f32 %v345_v27, 0.0 }
  0xf6   :  { %v805_v33 = vcombine.low %v773_v24, %v774_v29  ;;  %v806_v34 = vcombine.low %v775_v25, %v776_v30 }
  0xf8   :  { %v813_v37 = vrot.slane %v805_v33, %v1071_v28  ;;  %v820_v38 = vrot.slane %v806_v34, %v1071_v28 }
  0xf9   :  { %v413_v41 = vpop.f32.mrf.mxu0  ;;  %v484_v42 = vpop.f32.mrf.mxu1 }
  0xfa   :  { %v821_v43 = vcombine.low %v813_v37, %v820_v38  ;;  %v414_v44 = vadd.f32 %v413_v41, %v140_v35  ;;  %v485_v45 = vadd.f32 %v484_v42, %v148_v36 }
  0xfb   :  { %v415_v46 = vpop.f32.mrf.mxu0  ;;  %v486_v47 = vpop.f32.mrf.mxu1 }
  0xfc   :  { %877 = vst [vmem:[#allocation8] sm:$0xff] %v821_v43  ;;  %v777_v48 = vmax.f32 %v414_v44, 0.0  ;;  %v779_v49 = vmax.f32 %v485_v45, 0.0  ;;  %v416_v50 = vadd.f32 %v415_v46, %v144_v39  ;;  %v487_v51 = vadd.f32 %v486_v47, %v152_v40 }
  0xfe   :  { %v778_v53 = vmax.f32 %v416_v50, 0.0  ;;  %v780_v54 = vmax.f32 %v487_v51, 0.0 }
 0x100   :  { %v822_v55 = vcombine.low %v777_v48, %v778_v53  ;;  %v823_v56 = vcombine.low %v779_v49, %v780_v54 }
 0x102   :  { %v830_v59 = vrot.slane %v822_v55, %v1071_v28  ;;  %v837_v60 = vrot.slane %v823_v56, %v1071_v28 }
 0x103   :  { %v555_v63 = vpop.f32.mrf.mxu0  ;;  %v626_v1 = vpop.f32.mrf.mxu1 }
 0x104   :  { %v838_v2 = vcombine.low %v830_v59, %v837_v60  ;;  %v556_v3 = vadd.f32 %v555_v63, %v156_v57  ;;  %v627_v4 = vadd.f32 %v626_v1, %v164_v58 }
 0x105   :  { %v557_v7 = vpop.f32.mrf.mxu0  ;;  %v628_v10 = vpop.f32.mrf.mxu1 }
 0x106   :  { %878 = vst [vmem:[#allocation8 + $0x8] sm:$0xff] %v838_v2  ;;  %v781_v0 = vmax.f32 %v556_v3, 0.0  ;;  %v783_v11 = vmax.f32 %v627_v4, 0.0  ;;  %v558_v12 = vadd.f32 %v557_v7, %v160_v61  ;;  %v629_v13 = vadd.f32 %v628_v10, %v168_v62 }
 0x108   :  { %v782_v5 = vmax.f32 %v558_v12, 0.0  ;;  %v784_v6 = vmax.f32 %v629_v13, 0.0 }
 0x10a   :  { %v839_v14 = vcombine.low %v781_v0, %v782_v5  ;;  %v840_v15 = vcombine.low %v783_v11, %v784_v6 }
 0x10c   :  { %v847_v8 = vrot.slane %v839_v14, %v1071_v28  ;;  %v854_v9 = vrot.slane %v840_v15, %v1071_v28 }
 0x10d   :  { %v697_v20 = vpop.f32.mrf.mxu0  ;;  %v768_v21 = vpop.f32.mrf.mxu1 }
 0x10e   :  { %v855_v24 = vcombine.low %v847_v8, %v854_v9  ;;  %v698_v25 = vadd.f32 %v697_v20, %v172_v16  ;;  %v769_v26 = vadd.f32 %v768_v21, %v180_v17 }
 0x10f   :  { %v699_v27 = vpop.f32.mrf.mxu0  ;;  %v770_v29 = vpop.f32.mrf.mxu1 }
 0x110   :  { %879 = vst [vmem:[#allocation8 + $0x10] sm:$0xff] %v855_v24  ;;  %v700_v30 = vadd.f32 %v699_v27, %v176_v18  ;;  %v771_v33 = vadd.f32 %v770_v29, %v184_v19  ;;  %v785_v34 = vmax.f32 %v698_v25, 0.0  ;;  %v787_v35 = vmax.f32 %v769_v26, 0.0 }
 0x112   :  { %v786_v22 = vmax.f32 %v700_v30, 0.0  ;;  %v788_v23 = vmax.f32 %v771_v33, 0.0 }
 0x114   :  { %v856_v36 = vcombine.low %v785_v34, %v786_v22  ;;  %v857_v37 = vcombine.low %v787_v35, %v788_v23 }
 0x116   :  { %v864_v31 = vrot.slane %v856_v36, %v1071_v28  ;;  %v871_v32 = vrot.slane %v857_v37, %v1071_v28 }
 0x118   :  { %v872_v38 = vcombine.low %v864_v31, %v871_v32 }
 0x11a   :  { %880 = vst [vmem:[#allocation8 + $0x18] sm:$0xff] %v872_v38 }
 0x11b   :  { %984 = shalt.err (!%p981_p5)
}
 0x11c   :  { %890 = dma.vmem_to_hbm [thread:$0]  %s888_s2, 512, %s1089_s3, [#allocation4]  }
 0x11d   :  { %997 = dma.done.wait [#allocation4], 512  }
 0x11e   :  { %998 = vsyncadd [#allocation4], 4294966784 }
 0x11f   :  { %894 = vsyncpa [#allocation3], 1 }
 0x120   :  { %895 = vsyncpa [#allocation6], 1 }
 0x121   :  { %896 = vsyncpa [#allocation4], 1 }

</bundles_post_ra>
